<compile_context>
chip_gen: v5e
topology: v5e:2x2
jax: 0.10.0
libtpu: 0.0.40
codegen_flags: <defaults>
</compile_context>

<pallas_src>
import functools

import jax
import jax.numpy as jnp
from jax import lax
from jax.experimental import pallas as pl
from jax.experimental.pallas import tpu as pltpu

BN_EPS = 1e-5
INPUT_DIM = 15


def _round_up(n, m):
    return ((n + m - 1) // m) * m


# ----------------------------- Pallas kernel --------------------------------
def _mlp_kernel(num_hidden, *refs):
    """refs = (x_ref, [w_i, b_i] * num_hidden, w_out_row, b_out, out_ref)."""
    x_ref = refs[0]
    out_ref = refs[-1]
    p = refs[1:-1]

    h = x_ref[...]                                      # (TB, 15) f32
    for l in range(num_hidden):
        w = p[2 * l]                                    # (F_in, F_out) bf16, BN-folded
        b = p[2 * l + 1]                                # (1, F_out) f32, BN-folded
        h = jnp.dot(h.astype(jnp.bfloat16), w[...],
                    preferred_element_type=jnp.float32) + b[...]
        h = jnp.maximum(h, 0.0)                         # ReLU (f32, VPU)
        # Dropout: identity in eval mode.
        # TODO(synk): training-mode dropout / BatchNorm batch-statistics not reproduced.

    w_out = p[2 * num_hidden]                           # (1, F_last) bf16
    b_out = p[2 * num_hidden + 1]                       # (1, 1) f32
    # Final layer has a single output unit: contract h's last dim against the weight row
    # (w_row @ h^T) so the result is a lane-dense (1, TB) row instead of a (TB, 1) column.
    y = lax.dot_general(
        w_out[...], h.astype(jnp.bfloat16),
        dimension_numbers=(((1,), (1,)), ((), ())),
        preferred_element_type=jnp.float32) + b_out[...]   # (1, TB) f32
    out_ref[...] = y


# ------------------------- BatchNorm folding (wrapper) -----------------------
def fold_bn_params(params, weight_dtype=jnp.bfloat16):
    """Module params (w,b,gamma,beta,mean,var)*H + (w_out,b_out) -> [(W',b')*H, w_out_row, b_out]."""
    num_hidden = (len(params) - 2) // 6
    folded = []
    i = 0
    for _ in range(num_hidden):
        w, b, gamma, beta, mean, var = params[i:i + 6]
        i += 6
        scale = gamma / jnp.sqrt(var + BN_EPS)                    # (1, n)
        folded.append((w * scale).astype(weight_dtype))           # (F_in, n)
        folded.append(((b - mean) * scale + beta).astype(jnp.float32))  # (1, n)
    w_out, b_out = params[i], params[i + 1]                       # (F_last, 1), (1, 1)
    folded.append(w_out.T.astype(weight_dtype))                   # (1, F_last)
    folded.append(b_out.astype(jnp.float32))                      # (1, 1)
    return folded


# --------------------------------- wrapper -----------------------------------
def polytope_forward(x, params, *, block_batch=512, weight_dtype=jnp.bfloat16):
    """x: (B, 15) f32. params: flat list from init_params(). Returns (B,) f32."""
    B, F = x.shape
    folded = fold_bn_params(params, weight_dtype=weight_dtype)
    num_hidden = (len(folded) - 2) // 2

    # Pad the batch so every grid step sees a full, aligned tile.
    b_pad = _round_up(B, 8)
    if b_pad > block_batch:
        assert block_batch % 128 == 0, "block_batch must be a multiple of 128"
        tb = block_batch
        b_pad = _round_up(B, tb)
    else:
        tb = b_pad
    x_p = x if b_pad == B else jnp.pad(x, ((0, b_pad - B), (0, 0)))
    num_tiles = b_pad // tb

    in_specs = [pl.BlockSpec((tb, F), lambda i: (i, 0))]
    for arr in folded:
        # Full-array block, constant index map -> weights stay resident in VMEM.
        in_specs.append(pl.BlockSpec(arr.shape, lambda i: (0, 0)))

    flops = 0
    for l in range(num_hidden):
        fi, fo = folded[2 * l].shape
        flops += 2 * b_pad * fi * fo
    flops += 2 * b_pad * folded[-2].shape[1]
    bytes_accessed = (int(x_p.size) * x_p.dtype.itemsize + b_pad * 4 +
                      sum(int(a.size) * a.dtype.itemsize for a in folded))

    out = pl.pallas_call(
        functools.partial(_mlp_kernel, num_hidden),
        out_shape=jax.ShapeDtypeStruct((1, b_pad), jnp.float32),
        grid=(num_tiles,),
        in_specs=in_specs,
        out_specs=pl.BlockSpec((1, tb), lambda i: (0, i)),
        compiler_params=pltpu.CompilerParams(
            dimension_semantics=("parallel",)),
        cost_estimate=pl.CostEstimate(flops=flops, transcendentals=0,
                                      bytes_accessed=bytes_accessed),
    )(x_p, *folded)
    return out[0, :B]   # lane-dense output -> slice + implicit squeeze(1)


# --------------------------- parameter construction --------------------------
def init_params(key, layers):
    """Deterministic init mirroring the module's shapes (PyTorch-style uniform bounds)."""
    params = []
    in_dim = INPUT_DIM
    for n in layers:
        key, k1, k2, k3, k4 = jax.random.split(key, 5)
        bound = 1.0 / float(in_dim) ** 0.5
        w = jax.random.uniform(k1, (in_dim, n), jnp.float32, -bound, bound)
        b = jax.random.uniform(k2, (1, n), jnp.float32, -bound, bound)
        gamma = jnp.ones((1, n), jnp.float32)
        beta = jnp.zeros((1, n), jnp.float32)
        # Non-trivial running stats so BatchNorm actually transforms the data.
        mean = 0.1 * jax.random.normal(k3, (1, n), jnp.float32)
        var = 1.0 + 0.1 * jax.random.uniform(k4, (1, n), jnp.float32)
        params += [w, b, gamma, beta, mean, var]
        in_dim = n
    key, k1, k2 = jax.random.split(key, 3)
    bound = 1.0 / float(in_dim) ** 0.5
    w_out = jax.random.uniform(k1, (in_dim, 1), jnp.float32, -bound, bound)
    b_out = jax.random.uniform(k2, (1, 1), jnp.float32, -bound, bound)
    params += [w_out, b_out]
    return params


# ------------------------------ pure-JAX references --------------------------
def reference_forward_f32(x, params):
    """Original module semantics (eval mode), full f32."""
    num_hidden = (len(params) - 2) // 6
    h = x
    i = 0
    for _ in range(num_hidden):
        w, b, gamma, beta, mean, var = params[i:i + 6]
        i += 6
        h = h @ w + b
        h = (h - mean) / jnp.sqrt(var + BN_EPS) * gamma + beta
        h = jnp.maximum(h, 0.0)
    w_out, b_out = params[i], params[i + 1]
    return (h @ w_out + b_out)[:, 0]


def reference_forward_matched(x, params):
    """Same BN folding + bf16-at-dot precision as the kernel (pure jnp)."""
    folded = fold_bn_params(params)
    num_hidden = (len(folded) - 2) // 2
    h = x
    for l in range(num_hidden):
        w, b = folded[2 * l], folded[2 * l + 1]
        h = jnp.dot(h.astype(jnp.bfloat16), w, preferred_element_type=jnp.float32) + b
        h = jnp.maximum(h, 0.0)
    w_out, b_out = folded[-2], folded[-1]
    y = jnp.dot(h.astype(jnp.bfloat16), w_out.T, preferred_element_type=jnp.float32) + b_out
    return y[:, 0]


if __name__ == "__main__":
    key = jax.random.PRNGKey(0)
    k_x, k_p, k_x2 = jax.random.split(key, 3)

    layers = [32, 64]          # hidden layer sizes
    dropout = [0.1, 0.0]       # only affects training mode; identity in eval
    batch = 10                 # not a multiple of 8 -> exercises the padding path

    x = jax.random.normal(k_x, (batch, INPUT_DIM), jnp.float32)
    params = init_params(k_p, layers)

    out = jax.block_until_ready(polytope_forward(x, params))
    assert out.shape == (batch,)

    ref_m = reference_forward_matched(x, params)
    ref_f = reference_forward_f32(x, params)
    assert jnp.allclose(out, ref_m, atol=1e-3, rtol=1e-3), (out, ref_m)
    assert jnp.allclose(out, ref_f, atol=3e-2, rtol=1e-2), (out, ref_f)

    # Larger batch: exercises the multi-tile, "parallel" batch grid.
    x2 = jax.random.normal(k_x2, (1000, INPUT_DIM), jnp.float32)
    out2 = jax.block_until_ready(polytope_forward(x2, params, block_batch=256))
    ref2 = reference_forward_matched(x2, params)
    assert out2.shape == (1000,)
    assert jnp.allclose(out2, ref2, atol=1e-3, rtol=1e-3)

    print("KERNEL_OK")
</pallas_src>

<mosaic_0001>
module attributes {stable_mosaic.version = 11 : i64} {
  func.func @_mlp_kernel(%arg0: i32, %arg1: memref<16x15xf32, #tpu.memory_space<vmem>>, %arg2: memref<15x32xbf16, #tpu.memory_space<vmem>>, %arg3: memref<1x32xf32, #tpu.memory_space<vmem>>, %arg4: memref<32x64xbf16, #tpu.memory_space<vmem>>, %arg5: memref<1x64xf32, #tpu.memory_space<vmem>>, %arg6: memref<1x64xbf16, #tpu.memory_space<vmem>>, %arg7: memref<1x1xf32, #tpu.memory_space<vmem>>, %arg8: memref<1x16xf32, #tpu.memory_space<vmem>>) attributes {dimension_semantics = [#tpu.dimension_semantics<parallel>], iteration_bounds = array<i64: 1>, scalar_prefetch = 0 : i64, scratch_operands = 0 : i64, tpu.core_type = #tpu.core_type<tc>, window_params = [{transform_indices = @transform_0, window_bounds = array<i64: 16, 15>}, {pipeline_mode = #tpu.pipeline_mode<synchronous>, transform_indices = @transform_1, window_bounds = array<i64: 15, 32>}, {pipeline_mode = #tpu.pipeline_mode<synchronous>, transform_indices = @transform_2, window_bounds = array<i64: 1, 32>}, {pipeline_mode = #tpu.pipeline_mode<synchronous>, transform_indices = @transform_3, window_bounds = array<i64: 32, 64>}, {pipeline_mode = #tpu.pipeline_mode<synchronous>, transform_indices = @transform_4, window_bounds = array<i64: 1, 64>}, {pipeline_mode = #tpu.pipeline_mode<synchronous>, transform_indices = @transform_5, window_bounds = array<i64: 1, 64>}, {pipeline_mode = #tpu.pipeline_mode<synchronous>, transform_indices = @transform_6, window_bounds = array<i64: 1, 1>}, {transform_indices = @transform_7, window_bounds = array<i64: 1, 16>}]} {
    %c0 = arith.constant 0 : index
    %c0_0 = arith.constant 0 : index
    %0 = vector.load %arg1[%c0, %c0_0] : memref<16x15xf32, #tpu.memory_space<vmem>>, vector<16x15xf32>
    %1 = arith.truncf %0 : vector<16x15xf32> to vector<16x15xbf16>
    %c0_1 = arith.constant 0 : index
    %c0_2 = arith.constant 0 : index
    %2 = vector.load %arg2[%c0_1, %c0_2] : memref<15x32xbf16, #tpu.memory_space<vmem>>, vector<15x32xbf16>
    %cst = arith.constant dense<0.000000e+00> : vector<16x32xf32>
    %3 = tpu.matmul %1, %2, %cst {dimension_numbers = #tpu.dot_dimension_numbers<[1], [0], [0], [1], [0, 0, 1, 1], [], []>} : vector<16x15xbf16>, vector<15x32xbf16>, vector<16x32xf32> -> vector<16x32xf32>
    %c0_3 = arith.constant 0 : index
    %c0_4 = arith.constant 0 : index
    %4 = vector.load %arg3[%c0_3, %c0_4] : memref<1x32xf32, #tpu.memory_space<vmem>>, vector<1x32xf32>
    %5 = vector.broadcast %4 : vector<1x32xf32> to vector<16x32xf32>
    %6 = arith.addf %3, %5 : vector<16x32xf32>
    %cst_5 = arith.constant 0.000000e+00 : f32
    %7 = vector.broadcast %cst_5 : f32 to vector<16x32xf32>
    %8 = arith.maximumf %6, %7 : vector<16x32xf32>
    %9 = arith.truncf %8 : vector<16x32xf32> to vector<16x32xbf16>
    %c0_6 = arith.constant 0 : index
    %c0_7 = arith.constant 0 : index
    %10 = vector.load %arg4[%c0_6, %c0_7] : memref<32x64xbf16, #tpu.memory_space<vmem>>, vector<32x64xbf16>
    %cst_8 = arith.constant dense<0.000000e+00> : vector<16x64xf32>
    %11 = tpu.matmul %9, %10, %cst_8 {dimension_numbers = #tpu.dot_dimension_numbers<[1], [0], [0], [1], [0, 0, 1, 1], [], []>} : vector<16x32xbf16>, vector<32x64xbf16>, vector<16x64xf32> -> vector<16x64xf32>
    %c0_9 = arith.constant 0 : index
    %c0_10 = arith.constant 0 : index
    %12 = vector.load %arg5[%c0_9, %c0_10] : memref<1x64xf32, #tpu.memory_space<vmem>>, vector<1x64xf32>
    %13 = vector.broadcast %12 : vector<1x64xf32> to vector<16x64xf32>
    %14 = arith.addf %11, %13 : vector<16x64xf32>
    %cst_11 = arith.constant 0.000000e+00 : f32
    %15 = vector.broadcast %cst_11 : f32 to vector<16x64xf32>
    %16 = arith.maximumf %14, %15 : vector<16x64xf32>
    %c0_12 = arith.constant 0 : index
    %c0_13 = arith.constant 0 : index
    %17 = vector.load %arg6[%c0_12, %c0_13] : memref<1x64xbf16, #tpu.memory_space<vmem>>, vector<1x64xbf16>
    %18 = arith.truncf %16 : vector<16x64xf32> to vector<16x64xbf16>
    %cst_14 = arith.constant dense<0.000000e+00> : vector<1x16xf32>
    %19 = tpu.matmul %17, %18, %cst_14 {dimension_numbers = #tpu.dot_dimension_numbers<[1], [1], [0], [0], [0, 0, 1, 0], [], []>} : vector<1x64xbf16>, vector<16x64xbf16>, vector<1x16xf32> -> vector<1x16xf32>
    %c0_15 = arith.constant 0 : index
    %c0_16 = arith.constant 0 : index
    %20 = vector.load %arg7[%c0_15, %c0_16] : memref<1x1xf32, #tpu.memory_space<vmem>>, vector<1x1xf32>
    %21 = vector.broadcast %20 : vector<1x1xf32> to vector<1x16xf32>
    %22 = arith.addf %19, %21 : vector<1x16xf32>
    %c0_17 = arith.constant 0 : index
    %c0_18 = arith.constant 0 : index
    %23 = vector.load %arg8[%c0_17, %c0_18] : memref<1x16xf32, #tpu.memory_space<vmem>>, vector<1x16xf32>
    tpu.vector_store %arg8[%c0_17, %c0_18], %22 {strides = array<i32>} : memref<1x16xf32, #tpu.memory_space<vmem>>, vector<1x16xf32>,
    return
  }
  func.func @transform_0(%arg0: i32) -> (i32, i32) {
    %c0_i32 = arith.constant 0 : i32
    %c0_i32_0 = arith.constant 0 : i32
    return %arg0, %c0_i32 : i32, i32
  }
  func.func @transform_1(%arg0: i32) -> (i32, i32) {
    %c0_i32 = arith.constant 0 : i32
    %c0_i32_0 = arith.constant 0 : i32
    %c0_i32_1 = arith.constant 0 : i32
    return %c0_i32, %c0_i32_0 : i32, i32
  }
  func.func @transform_2(%arg0: i32) -> (i32, i32) {
    %c0_i32 = arith.constant 0 : i32
    %c0_i32_0 = arith.constant 0 : i32
    %c0_i32_1 = arith.constant 0 : i32
    return %c0_i32, %c0_i32_0 : i32, i32
  }
  func.func @transform_3(%arg0: i32) -> (i32, i32) {
    %c0_i32 = arith.constant 0 : i32
    %c0_i32_0 = arith.constant 0 : i32
    %c0_i32_1 = arith.constant 0 : i32
    return %c0_i32, %c0_i32_0 : i32, i32
  }
  func.func @transform_4(%arg0: i32) -> (i32, i32) {
    %c0_i32 = arith.constant 0 : i32
    %c0_i32_0 = arith.constant 0 : i32
    %c0_i32_1 = arith.constant 0 : i32
    return %c0_i32, %c0_i32_0 : i32, i32
  }
  func.func @transform_5(%arg0: i32) -> (i32, i32) {
    %c0_i32 = arith.constant 0 : i32
    %c0_i32_0 = arith.constant 0 : i32
    %c0_i32_1 = arith.constant 0 : i32
    return %c0_i32, %c0_i32_0 : i32, i32
  }
  func.func @transform_6(%arg0: i32) -> (i32, i32) {
    %c0_i32 = arith.constant 0 : i32
    %c0_i32_0 = arith.constant 0 : i32
    %c0_i32_1 = arith.constant 0 : i32
    return %c0_i32, %c0_i32_0 : i32, i32
  }
  func.func @transform_7(%arg0: i32) -> (i32, i32) {
    %c0_i32 = arith.constant 0 : i32
    %c0_i32_0 = arith.constant 0 : i32
    return %c0_i32, %arg0 : i32, i32
  }
}

</mosaic_0001>

<bundles_post_ra>
// kernel: tpu_custom_call.1
= control target key start
LH: loop header
LB: loop body
LE: loop exit
PB: predicated region body
PF: predicated region fallthrough
CT: control target
= control target key end

     0   :  { %s415_s0 = inlined_call_operand.hbm [shape: f32[16,15], index: 0, kind: input, shape index: {}]   ;;  %s416_s1 = inlined_call_operand.hbm [shape: bf16[15,32], index: 1, kind: input, shape index: {}]   ;;  %s417_s2 = inlined_call_operand.vmem [shape: f32[1,32], index: 2, kind: input, shape index: {}]   ;;  %s418_s3 = inlined_call_operand.hbm [shape: bf16[32,64], index: 3, kind: input, shape index: {}]   ;;  %s419_s4 = inlined_call_operand.vmem [shape: f32[1,64], index: 4, kind: input, shape index: {}]   ;;  %s420_s5 = inlined_call_operand.vmem [shape: bf16[1,64], index: 5, kind: input, shape index: {}]   ;;  %s421_s6 = inlined_call_operand.<no memory space> [shape: f32[1,1], index: 6, kind: input, shape index: {}]   ;;  %s422_s7 = inlined_call_operand.hbm [shape: f32[1,16], index: 7, kind: output, shape index: {}]  }
   0x1   :  { %v12_v0 = vstv %s421_s6 }
   0x2   :  { %13 = vst [vmem:[#allocation2] sm:$0x1] %v12_v0 }
   0x3   :  { %14 = vsyncpa [#allocation4], 0 }
   0x4   :  { %15 = vsyncpa [#allocation7], 0  ;;  %s34_s28 = sshll.u32 %s416_s1, 4  ;;  %s35_s28 = int_to_ptr.hbm [resolvable:$true] %s34_s28 }
   0x5   :  { %16 = vsyncpa [#allocation5], 0  ;;  %s341_s29 = smov [#allocation6]   ;;  %s21_s10 = sshll.u32 %s415_s0, 4  ;;  %s22_s10 = int_to_ptr.hbm [resolvable:$true] %s21_s10 }
   0x6   :  { %s36_s30 = sshll.u32 %s341_s29, 4  ;;  %s342_s11 = smov 64   ;;  %s37_s30 = int_to_ptr.vmem [resolvable:$true] %s36_s30 }
   0x7   :  { %s343_s12 = smov 4   ;;  %s344_s6 = smov [#allocation3]  }
   0x8   :  { %42 = dma.hbm_to_vmem [thread:$0]  %s35_s28, 128, %s37_s30, [#allocation7], %s342_s11, %s342_s11, %s343_s12  }
   0x9   :  { %s23_s13 = sshll.u32 %s344_s6, 4  ;;  %s345_s14 = smov 128   ;;  %s24_s13 = int_to_ptr.vmem [resolvable:$true] %s23_s13 }
   0xa   :  { %s346_s15 = smov 8   ;;  %s49_s17 = sshll.u32 %s418_s3, 4  ;;  %s50_s17 = int_to_ptr.hbm [resolvable:$true] %s49_s17 }
   0xb   :  { %29 = dma.hbm_to_vmem [thread:$0]  %s22_s10, 256, %s24_s13, [#allocation4], %s345_s14, %s345_s14, %s346_s15  }
   0xc   :  { %s347_s18 = smov [#allocation8]  }
   0xd   :  { %s51_s19 = sshll.u32 %s347_s18, 4  ;;  %s52_s19 = int_to_ptr.vmem [resolvable:$true] %s51_s19 }
   0xe   :  { %57 = dma.hbm_to_vmem [thread:$0]  %s50_s17, 256, %s52_s19, [#allocation7], %s342_s11, %s342_s11, %s343_s12  }
   0xf   :  { %335 = dma.done.wait [#allocation4], 256  }
  0x10   :  { %336 = vsyncadd [#allocation4], 4294967040 }
  0x11   :  { %337 = dma.done.wait [#allocation7], 384  }
  0x12   :  { %338 = vsyncadd [#allocation7], 4294966912  ;;  %vm95_vm0 = vcmask 1046528   ;;  %vm96_vm1 = vcmask 1047552   ;;  %v348_v1 = vmov 65535   ;;  %v223_v4 = vld [vmem:[#allocation6] sm:$0xff] }
  0x13   :  { %v97_v2 = vsel %vm95_vm0, 4294967295, %v348_v1  ;;  %v77_v5 = vld [vmem:[#allocation3] sm:$0xff]  ;;  %v78_v6 = vld [vmem:[#allocation3 + $0x8] sm:$0xff]  ;;  %vm91_vm2 = vcmask 121856   ;;  %v224_v10 = vld [vmem:[#allocation8] sm:$0xff]  ;;  %vm139_vm3 = vcmask 261120  }
  0x14   :  { %v98_v3 = vsel %vm96_vm1, %v97_v2, 0  ;;  %v79_v8 = vpack.c.bf16 %v78_v6, %v77_v5  ;;  %v225_v9 = vld [vmem:[#allocation8 + $0x8] sm:$0xff]  ;;  %v237_v12 = vld [vmem:[%s417_s2] ss:$0 sm:$0xff]  ;;  %v349_v20 = vmov 0   ;;  %vm168_vm4 = vcmask 523264  }
  0x15   :  { %v100_v7 = vand.u32 %v223_v4, %v98_v3  ;;  %149 = vmatpush.bf16.msra.mxu1 %v225_v9  ;;  %v161_v19 = vld [vmem:[#allocation2] sm:$0x1]  ;;  %236 = vset.pattern.permute.xlu0 %v349_v20  ;;  %s350_s23 = smov [#allocation9]   ;;  %s197_s26 = sshll.u32 %s422_s7, 4  ;;  %vm188_vm5 = vcmask 122880   ;;  %s198_s26 = int_to_ptr.hbm [resolvable:$true] %s197_s26 }
  0x16   :  { %164 = vperm.xlu0 %236, %v161_v19   ;;  %v238_v22 = vld [vmem:[%s419_s4] ss:$0 sm:$0xff]  ;;  %s195_s24 = sshll.u32 %s350_s23, 4  ;;  %s196_s24 = int_to_ptr.vmem [resolvable:$true] %s195_s24 }
  0x17   :  { %109 = vmatpush.bf16.msra.mxu0 %v100_v7  ;;  %v159_v30 = vld [vmem:[%s420_s5] sm:$0x1] }
  0x19   :  { %150 = vmatpush.bf16.msra.mxu1 %v224_v10 }
  0x1a   :  { %212 = vmatmul.msk.bf16.vlgmr.msra.gmra.mxu0 %vm91_vm2, %v79_v8 }
  0x88   :  { %v165_v31 = vpop.permute.xlu0 %164 }
  0x89   :  { %v167_v32 = vperm.slane %v165_v31, 0 }
  0x97   :  { %v111_v11 = vpop.f32.mrf.mxu0 }
  0x98   :  { %v112_v13 = vadd.f32 %v237_v12, %v111_v11 }
  0x9a   :  { %v116_v16 = vmax.f32 %v112_v13, 0.0 }
  0x9f   :  { %v113_v14 = vpop.f32.mrf.mxu0 }
  0xa0   :  { %v114_v15 = vadd.f32 %v237_v12, %v113_v14 }
  0xa2   :  { %v117_v17 = vmax.f32 %v114_v15, 0.0 }
  0xa4   :  { %v118_v18 = vpack.c.bf16 %v117_v17, %v116_v16 }
  0xa6   :  { %221 = vmatmul.msk.bf16.vlgmr.msra.gmra.mxu1 %vm139_vm3, %v118_v18 }
 0x123   :  { %v152_v21 = vpop.f32.mrf.mxu1 }
 0x124   :  { %v153_v23 = vadd.f32 %v238_v22, %v152_v21 }
 0x126   :  { %v157_v26 = vmax.f32 %v153_v23, 0.0 }
 0x12b   :  { %v154_v24 = vpop.f32.mrf.mxu1 }
 0x12c   :  { %v155_v25 = vadd.f32 %v238_v22, %v154_v24 }
 0x12e   :  { %v158_v27 = vmax.f32 %v155_v25, 0.0 }
 0x130   :  { %v160_v28 = vpack.c.bf16 %v158_v27, %v157_v26 }
 0x132   :  { %v173_v29 = vsel %vm168_vm4, %v160_v28, 0 }
 0x133   :  { %182 = vmatpush.bf16.xpose.msra.mxu2 %v173_v29 }
 0x13a   :  { %222 = vmatmul.msk.bf16.vlgmr.msra.gmra.mxu2 %vm168_vm4, %v159_v30 }
 0x1bd   :  { %v184_v33 = vpop.f32.mrf.mxu2 }
 0x1be   :  { %v185_v34 = vadd.f32 %v184_v33, %v167_v32 }
 0x1c0   :  { %189 = vst.msk [vmem:[#allocation9] sm:$0x1] %vm188_vm5, %v185_v34 }
 0x1c1   :  { %200 = dma.vmem_to_hbm [thread:$0]  %s196_s24, 16, %s198_s26, [#allocation5]  }
 0x1c5   :  { %v186_v35 = vpop.f32.mrf.mxu2 }
 0x1c6   :  { %339 = dma.done.wait [#allocation5], 16  }
 0x1c7   :  { %340 = vsyncadd [#allocation5], 4294967280 }
 0x1c8   :  { %205 = vsyncpa [#allocation4], 1 }
 0x1c9   :  { %206 = vsyncpa [#allocation7], 1 }
 0x1ca   :  { %207 = vsyncpa [#allocation5], 1 }

</bundles_post_ra>
